<compile_context>
chip_gen: v7x
topology: tpu7x:2x2x1
jax: 0.10.0
libtpu: 0.0.40
codegen_flags: <defaults>
</compile_context>

<pallas_src>
import jax
import jax.numpy as jnp
from jax.experimental import pallas as pl
from jax.experimental.pallas import tpu as pltpu


# ---------------------------------------------------------------------------
# Pallas kernels
# ---------------------------------------------------------------------------
def _combine_pad_kernel(w_ref, h_ref, o_ref):
    """Weighted layer combine + reflect-pad row, tiled over T.

    Grid: (B, nt + 1) with nt = T // Tt.  For t < nt the step produces the
    combined rows [t*Tt, (t+1)*Tt).  The extra final step (t == nt) owns the
    output block starting at row T (only its first row is in bounds; the rest
    is dropped on writeback) and re-reads the last real tile to emit the
    reflect-pad row  out[T] = combine(h[:, T-2]).

    w_ref: SMEM (L,)        softmaxed layer weights (scalar prefetch).
    h_ref: VMEM (L, Tt, D)  hidden-state tile, all layers blocked together.
    o_ref: VMEM (Tt, D)     output tile (f32).
    """
    t = pl.program_id(1)
    n_t = pl.num_programs(1)                  # = nt + 1
    L, Tt, _ = h_ref.shape

    # Unrolled scalar MAC over the L layers (VPU; kernel is HBM-bound anyway).
    acc = w_ref[0] * h_ref[0].astype(jnp.float32)
    for l in range(1, L):
        acc = acc + w_ref[l] * h_ref[l].astype(jnp.float32)

    @pl.when(t < n_t - 1)
    def _():
        o_ref[...] = acc

    @pl.when(t == n_t - 1)
    def _():
        # Reflect pad (0, 1): global row T copies global row T - 2, which is
        # local row Tt - 2 of the re-fetched last real tile.
        o_ref[0:1, :] = acc[Tt - 2:Tt - 1, :]


def _combine_pad_full_kernel(w_ref, h_ref, o_ref):
    """Fallback for T with no multiple-of-8 tile: one full-T block per batch.

    w_ref: SMEM (L,); h_ref: VMEM (L, T, D); o_ref: VMEM (T + 1, D).
    """
    L, T, _ = h_ref.shape
    acc = w_ref[0] * h_ref[0].astype(jnp.float32)
    for l in range(1, L):
        acc = acc + w_ref[l] * h_ref[l].astype(jnp.float32)
    o_ref[0:T, :] = acc
    o_ref[T:T + 1, :] = acc[T - 2:T - 1, :]


# ---------------------------------------------------------------------------
# Wrappers
# ---------------------------------------------------------------------------
def _pick_t_tile(T, D, L, itemsize, max_block_bytes=2 * 1024 * 1024):
    """Largest Tt that divides T, is a multiple of 8, and keeps the
    (L, Tt, D) input block within ~max_block_bytes (byte-aware, not a fixed
    row cap).  Returns None when no such tile exists (caller falls back)."""
    bytes_per_row = max(1, L * D * itemsize)
    max_rows = max(8, max_block_bytes // bytes_per_row)
    best = None
    for tt in range(8, min(T, max_rows) + 1, 8):
        if T % tt == 0:
            best = tt
    return best


def _combine_and_pad_pallas(h_lbtd, weights, *, max_block_bytes=2 * 1024 * 1024):
    """out[b, t, d] = sum_l weights[l] * h[l, b, t, d];  out[b, T] = out[b, T-2]."""
    L, B, T, D = h_lbtd.shape
    if T < 2:
        # PyTorch's reflect pad of width 1 requires at least 2 rows.
        raise ValueError("reflect pad (0, 1) requires T >= 2")
    weights = weights.astype(jnp.float32)
    itemsize = jnp.dtype(h_lbtd.dtype).itemsize
    Tt = _pick_t_tile(T, D, L, itemsize, max_block_bytes)

    if Tt is None:
        # TODO(synk): for very long, awkwardly-factored T this keeps a full
        # (L, T, D) block in VMEM; pad T to a multiple of 8 upstream instead.
        return pl.pallas_call(
            _combine_pad_full_kernel,
            out_shape=jax.ShapeDtypeStruct((B, T + 1, D), jnp.float32),
            grid_spec=pltpu.PrefetchScalarGridSpec(
                num_scalar_prefetch=1,
                grid=(B,),
                in_specs=[pl.BlockSpec((L, None, T, D),
                                       lambda b, w: (0, b, 0, 0))],
                out_specs=pl.BlockSpec((None, T + 1, D),
                                       lambda b, w: (b, 0, 0)),
            ),
            compiler_params=pltpu.CompilerParams(
                dimension_semantics=("parallel",),
                vmem_limit_bytes=32 * 1024 * 1024),
        )(weights, h_lbtd)

    nt = T // Tt
    return pl.pallas_call(
        _combine_pad_kernel,
        out_shape=jax.ShapeDtypeStruct((B, T + 1, D), jnp.float32),
        grid_spec=pltpu.PrefetchScalarGridSpec(
            num_scalar_prefetch=1,                 # softmaxed weights -> SMEM
            grid=(B, nt + 1),                      # last t step emits pad row
            in_specs=[pl.BlockSpec(
                (L, None, Tt, D),
                # pad step re-fetches the last real tile (contains row T-2)
                lambda b, t, w, _last=nt - 1: (0, b, jnp.minimum(t, _last), 0))],
            out_specs=pl.BlockSpec((None, Tt, D), lambda b, t, w: (b, t, 0)),
        ),
        compiler_params=pltpu.CompilerParams(
            dimension_semantics=("parallel", "parallel"),
            vmem_limit_bytes=32 * 1024 * 1024),
    )(weights, h_lbtd)


def _surrogate_hidden_states(x, encoder_weights):
    # TODO(synk): AutoModel.from_pretrained(...) (pretrained HF transformer) has
    # no Pallas equivalent; a deterministic surrogate stack of tanh projections
    # stands in for it and yields `output_hidden_states` (L = encoder_size + 1).
    hs = [x]
    h = x
    for W in encoder_weights:
        h = jnp.tanh(h @ W)
        hs.append(h)
    return hs                                   # list of (B, T, D) f32


def huggingface_frontend_forward(x, params, use_last=False,
                                 *, max_block_bytes=2 * 1024 * 1024):
    """Mirror of HuggingfaceFrontend.forward.

    x: (B, T, D) surrogate features fed to the (surrogate) encoder.
    params: {'encoder_weights': [(D, D)] * encoder_size,
             'layer_weights':  (encoder_size + 1,)}
    """
    hs = _surrogate_hidden_states(x, params["encoder_weights"])
    if use_last:
        # No 13-layer stack: only the final hidden state is read (f32, exact);
        # the kernel just appends the reflect-pad row (identity weight).
        h = hs[-1][None]                                   # (1, B, T, D)
        w = jnp.ones((1,), dtype=jnp.float32)
    else:
        # bf16 stack halves HBM traffic into the mem-bound combine kernel; the
        # kernel accumulates in f32.
        h = jnp.stack([hi.astype(jnp.bfloat16) for hi in hs], axis=0)
        w = jax.nn.softmax(params["layer_weights"].astype(jnp.float32))
    return _combine_and_pad_pallas(h, w, max_block_bytes=max_block_bytes)


# ---------------------------------------------------------------------------
# Demo / correctness check
# ---------------------------------------------------------------------------
if __name__ == "__main__":
    key = jax.random.PRNGKey(0)
    B, T, D = 2, 16, 32
    encoder_size = 12
    L = encoder_size + 1                         # 13 hidden states / weights

    kx, kw = jax.random.split(key)
    x = jax.random.normal(kx, (B, T, D), dtype=jnp.float32)
    enc_keys = jax.random.split(kw, encoder_size)
    encoder_weights = [0.1 * jax.random.normal(k, (D, D), dtype=jnp.float32)
                       for k in enc_keys]
    layer_weights = jnp.ones((L,), dtype=jnp.float32)      # torch.ones(13) init
    params = {"encoder_weights": encoder_weights, "layer_weights": layer_weights}

    # pure-JAX reference, built from the same bf16-rounded stack the kernel sees
    hs = _surrogate_hidden_states(x, encoder_weights)
    stack_bf = jnp.stack(hs, axis=0).astype(jnp.bfloat16).astype(jnp.float32)
    w_sm = jax.nn.softmax(layer_weights)
    comb = jnp.sum(stack_bf * w_sm[:, None, None, None], axis=0)        # (B,T,D)
    ref = jnp.concatenate([comb, comb[:, T - 2:T - 1, :]], axis=1)      # reflect

    # default path (single full-T tile + pad step)
    out = jax.block_until_ready(huggingface_frontend_forward(x, params))
    assert out.shape == (B, T + 1, D), out.shape
    assert jnp.allclose(out, ref, atol=1e-4, rtol=1e-4), \
        float(jnp.max(jnp.abs(out - ref)))

    # multi-tile path (force Tt=8 -> two real T tiles + pad step)
    out_tiled = jax.block_until_ready(
        huggingface_frontend_forward(x, params, max_block_bytes=8 * L * D * 2))
    assert jnp.allclose(out_tiled, ref, atol=1e-4, rtol=1e-4), \
        float(jnp.max(jnp.abs(out_tiled - ref)))

    # awkward-T fallback path (T=10 has no multiple-of-8 tile)
    x10 = x[:, :10, :]
    out10 = jax.block_until_ready(huggingface_frontend_forward(x10, params))
    hs10 = _surrogate_hidden_states(x10, encoder_weights)
    stack10 = jnp.stack(hs10, axis=0).astype(jnp.bfloat16).astype(jnp.float32)
    comb10 = jnp.sum(stack10 * w_sm[:, None, None, None], axis=0)
    ref10 = jnp.concatenate([comb10, comb10[:, 8:9, :]], axis=1)
    assert out10.shape == (B, 11, D)
    assert jnp.allclose(out10, ref10, atol=1e-4, rtol=1e-4), \
        float(jnp.max(jnp.abs(out10 - ref10)))

    # use_last=True path (no stack, exact f32 passthrough + pad)
    out_last = jax.block_until_ready(
        huggingface_frontend_forward(x, params, use_last=True))
    ref_last = jnp.concatenate([hs[-1], hs[-1][:, T - 2:T - 1, :]], axis=1)
    assert out_last.shape == (B, T + 1, D)
    assert jnp.allclose(out_last, ref_last, atol=1e-5, rtol=1e-5), \
        float(jnp.max(jnp.abs(out_last - ref_last)))

    print("KERNEL_OK")
</pallas_src>

<mosaic_0001>
module attributes {stable_mosaic.version = 11 : i64} {
  func.func @_combine_pad_kernel(%arg0: i32, %arg1: i32, %arg2: memref<13xf32, #tpu.memory_space<smem>>, %arg3: memref<13x1x16x32xbf16, #tpu.memory_space<vmem>>, %arg4: memref<1x16x32xf32, #tpu.memory_space<vmem>>) attributes {dimension_semantics = [#tpu.dimension_semantics<parallel>, #tpu.dimension_semantics<parallel>], iteration_bounds = array<i64: 2, 2>, scalar_prefetch = 1 : i64, scratch_operands = 0 : i64, tpu.core_type = #tpu.core_type<tc>, window_params = [{transform_indices = @transform_0, window_bounds = array<i64: 13, 1, 16, 32>}, {transform_indices = @transform_1, window_bounds = array<i64: 1, 16, 32>}]} {
    %c0 = arith.constant 0 : index
    %0 = memref.load %arg2[%c0] : memref<13xf32, #tpu.memory_space<smem>>
    %c0_0 = arith.constant 0 : index
    %c0_1 = arith.constant 0 : index
    %c0_2 = arith.constant 0 : index
    %c0_3 = arith.constant 0 : index
    %1 = vector.load %arg3[%c0_0, %c0_1, %c0_2, %c0_3] : memref<13x1x16x32xbf16, #tpu.memory_space<vmem>>, vector<1x1x16x32xbf16>
    %2 = vector.shape_cast %1 : vector<1x1x16x32xbf16> to vector<16x32xbf16>
    %3 = arith.extf %2 : vector<16x32xbf16> to vector<16x32xf32>
    %4 = vector.broadcast %0 : f32 to vector<16x32xf32>
    %5 = arith.mulf %4, %3 : vector<16x32xf32>
    %c1 = arith.constant 1 : index
    %6 = memref.load %arg2[%c1] : memref<13xf32, #tpu.memory_space<smem>>
    %c1_4 = arith.constant 1 : index
    %c0_5 = arith.constant 0 : index
    %c0_6 = arith.constant 0 : index
    %c0_7 = arith.constant 0 : index
    %7 = vector.load %arg3[%c1_4, %c0_5, %c0_6, %c0_7] : memref<13x1x16x32xbf16, #tpu.memory_space<vmem>>, vector<1x1x16x32xbf16>
    %8 = vector.shape_cast %7 : vector<1x1x16x32xbf16> to vector<16x32xbf16>
    %9 = arith.extf %8 : vector<16x32xbf16> to vector<16x32xf32>
    %10 = vector.broadcast %6 : f32 to vector<16x32xf32>
    %11 = arith.mulf %10, %9 : vector<16x32xf32>
    %12 = arith.addf %5, %11 : vector<16x32xf32>
    %c2 = arith.constant 2 : index
    %13 = memref.load %arg2[%c2] : memref<13xf32, #tpu.memory_space<smem>>
    %c2_8 = arith.constant 2 : index
    %c0_9 = arith.constant 0 : index
    %c0_10 = arith.constant 0 : index
    %c0_11 = arith.constant 0 : index
    %14 = vector.load %arg3[%c2_8, %c0_9, %c0_10, %c0_11] : memref<13x1x16x32xbf16, #tpu.memory_space<vmem>>, vector<1x1x16x32xbf16>
    %15 = vector.shape_cast %14 : vector<1x1x16x32xbf16> to vector<16x32xbf16>
    %16 = arith.extf %15 : vector<16x32xbf16> to vector<16x32xf32>
    %17 = vector.broadcast %13 : f32 to vector<16x32xf32>
    %18 = arith.mulf %17, %16 : vector<16x32xf32>
    %19 = arith.addf %12, %18 : vector<16x32xf32>
    %c3 = arith.constant 3 : index
    %20 = memref.load %arg2[%c3] : memref<13xf32, #tpu.memory_space<smem>>
    %c3_12 = arith.constant 3 : index
    %c0_13 = arith.constant 0 : index
    %c0_14 = arith.constant 0 : index
    %c0_15 = arith.constant 0 : index
    %21 = vector.load %arg3[%c3_12, %c0_13, %c0_14, %c0_15] : memref<13x1x16x32xbf16, #tpu.memory_space<vmem>>, vector<1x1x16x32xbf16>
    %22 = vector.shape_cast %21 : vector<1x1x16x32xbf16> to vector<16x32xbf16>
    %23 = arith.extf %22 : vector<16x32xbf16> to vector<16x32xf32>
    %24 = vector.broadcast %20 : f32 to vector<16x32xf32>
    %25 = arith.mulf %24, %23 : vector<16x32xf32>
    %26 = arith.addf %19, %25 : vector<16x32xf32>
    %c4 = arith.constant 4 : index
    %27 = memref.load %arg2[%c4] : memref<13xf32, #tpu.memory_space<smem>>
    %c4_16 = arith.constant 4 : index
    %c0_17 = arith.constant 0 : index
    %c0_18 = arith.constant 0 : index
    %c0_19 = arith.constant 0 : index
    %28 = vector.load %arg3[%c4_16, %c0_17, %c0_18, %c0_19] : memref<13x1x16x32xbf16, #tpu.memory_space<vmem>>, vector<1x1x16x32xbf16>
    %29 = vector.shape_cast %28 : vector<1x1x16x32xbf16> to vector<16x32xbf16>
    %30 = arith.extf %29 : vector<16x32xbf16> to vector<16x32xf32>
    %31 = vector.broadcast %27 : f32 to vector<16x32xf32>
    %32 = arith.mulf %31, %30 : vector<16x32xf32>
    %33 = arith.addf %26, %32 : vector<16x32xf32>
    %c5 = arith.constant 5 : index
    %34 = memref.load %arg2[%c5] : memref<13xf32, #tpu.memory_space<smem>>
    %c5_20 = arith.constant 5 : index
    %c0_21 = arith.constant 0 : index
    %c0_22 = arith.constant 0 : index
    %c0_23 = arith.constant 0 : index
    %35 = vector.load %arg3[%c5_20, %c0_21, %c0_22, %c0_23] : memref<13x1x16x32xbf16, #tpu.memory_space<vmem>>, vector<1x1x16x32xbf16>
    %36 = vector.shape_cast %35 : vector<1x1x16x32xbf16> to vector<16x32xbf16>
    %37 = arith.extf %36 : vector<16x32xbf16> to vector<16x32xf32>
    %38 = vector.broadcast %34 : f32 to vector<16x32xf32>
    %39 = arith.mulf %38, %37 : vector<16x32xf32>
    %40 = arith.addf %33, %39 : vector<16x32xf32>
    %c6 = arith.constant 6 : index
    %41 = memref.load %arg2[%c6] : memref<13xf32, #tpu.memory_space<smem>>
    %c6_24 = arith.constant 6 : index
    %c0_25 = arith.constant 0 : index
    %c0_26 = arith.constant 0 : index
    %c0_27 = arith.constant 0 : index
    %42 = vector.load %arg3[%c6_24, %c0_25, %c0_26, %c0_27] : memref<13x1x16x32xbf16, #tpu.memory_space<vmem>>, vector<1x1x16x32xbf16>
    %43 = vector.shape_cast %42 : vector<1x1x16x32xbf16> to vector<16x32xbf16>
    %44 = arith.extf %43 : vector<16x32xbf16> to vector<16x32xf32>
    %45 = vector.broadcast %41 : f32 to vector<16x32xf32>
    %46 = arith.mulf %45, %44 : vector<16x32xf32>
    %47 = arith.addf %40, %46 : vector<16x32xf32>
    %c7 = arith.constant 7 : index
    %48 = memref.load %arg2[%c7] : memref<13xf32, #tpu.memory_space<smem>>
    %c7_28 = arith.constant 7 : index
    %c0_29 = arith.constant 0 : index
    %c0_30 = arith.constant 0 : index
    %c0_31 = arith.constant 0 : index
    %49 = vector.load %arg3[%c7_28, %c0_29, %c0_30, %c0_31] : memref<13x1x16x32xbf16, #tpu.memory_space<vmem>>, vector<1x1x16x32xbf16>
    %50 = vector.shape_cast %49 : vector<1x1x16x32xbf16> to vector<16x32xbf16>
    %51 = arith.extf %50 : vector<16x32xbf16> to vector<16x32xf32>
    %52 = vector.broadcast %48 : f32 to vector<16x32xf32>
    %53 = arith.mulf %52, %51 : vector<16x32xf32>
    %54 = arith.addf %47, %53 : vector<16x32xf32>
    %c8 = arith.constant 8 : index
    %55 = memref.load %arg2[%c8] : memref<13xf32, #tpu.memory_space<smem>>
    %c8_32 = arith.constant 8 : index
    %c0_33 = arith.constant 0 : index
    %c0_34 = arith.constant 0 : index
    %c0_35 = arith.constant 0 : index
    %56 = vector.load %arg3[%c8_32, %c0_33, %c0_34, %c0_35] : memref<13x1x16x32xbf16, #tpu.memory_space<vmem>>, vector<1x1x16x32xbf16>
    %57 = vector.shape_cast %56 : vector<1x1x16x32xbf16> to vector<16x32xbf16>
    %58 = arith.extf %57 : vector<16x32xbf16> to vector<16x32xf32>
    %59 = vector.broadcast %55 : f32 to vector<16x32xf32>
    %60 = arith.mulf %59, %58 : vector<16x32xf32>
    %61 = arith.addf %54, %60 : vector<16x32xf32>
    %c9 = arith.constant 9 : index
    %62 = memref.load %arg2[%c9] : memref<13xf32, #tpu.memory_space<smem>>
    %c9_36 = arith.constant 9 : index
    %c0_37 = arith.constant 0 : index
    %c0_38 = arith.constant 0 : index
    %c0_39 = arith.constant 0 : index
    %63 = vector.load %arg3[%c9_36, %c0_37, %c0_38, %c0_39] : memref<13x1x16x32xbf16, #tpu.memory_space<vmem>>, vector<1x1x16x32xbf16>
    %64 = vector.shape_cast %63 : vector<1x1x16x32xbf16> to vector<16x32xbf16>
    %65 = arith.extf %64 : vector<16x32xbf16> to vector<16x32xf32>
    %66 = vector.broadcast %62 : f32 to vector<16x32xf32>
    %67 = arith.mulf %66, %65 : vector<16x32xf32>
    %68 = arith.addf %61, %67 : vector<16x32xf32>
    %c10 = arith.constant 10 : index
    %69 = memref.load %arg2[%c10] : memref<13xf32, #tpu.memory_space<smem>>
    %c10_40 = arith.constant 10 : index
    %c0_41 = arith.constant 0 : index
    %c0_42 = arith.constant 0 : index
    %c0_43 = arith.constant 0 : index
    %70 = vector.load %arg3[%c10_40, %c0_41, %c0_42, %c0_43] : memref<13x1x16x32xbf16, #tpu.memory_space<vmem>>, vector<1x1x16x32xbf16>
    %71 = vector.shape_cast %70 : vector<1x1x16x32xbf16> to vector<16x32xbf16>
    %72 = arith.extf %71 : vector<16x32xbf16> to vector<16x32xf32>
    %73 = vector.broadcast %69 : f32 to vector<16x32xf32>
    %74 = arith.mulf %73, %72 : vector<16x32xf32>
    %75 = arith.addf %68, %74 : vector<16x32xf32>
    %c11 = arith.constant 11 : index
    %76 = memref.load %arg2[%c11] : memref<13xf32, #tpu.memory_space<smem>>
    %c11_44 = arith.constant 11 : index
    %c0_45 = arith.constant 0 : index
    %c0_46 = arith.constant 0 : index
    %c0_47 = arith.constant 0 : index
    %77 = vector.load %arg3[%c11_44, %c0_45, %c0_46, %c0_47] : memref<13x1x16x32xbf16, #tpu.memory_space<vmem>>, vector<1x1x16x32xbf16>
    %78 = vector.shape_cast %77 : vector<1x1x16x32xbf16> to vector<16x32xbf16>
    %79 = arith.extf %78 : vector<16x32xbf16> to vector<16x32xf32>
    %80 = vector.broadcast %76 : f32 to vector<16x32xf32>
    %81 = arith.mulf %80, %79 : vector<16x32xf32>
    %82 = arith.addf %75, %81 : vector<16x32xf32>
    %c12 = arith.constant 12 : index
    %83 = memref.load %arg2[%c12] : memref<13xf32, #tpu.memory_space<smem>>
    %c12_48 = arith.constant 12 : index
    %c0_49 = arith.constant 0 : index
    %c0_50 = arith.constant 0 : index
    %c0_51 = arith.constant 0 : index
    %84 = vector.load %arg3[%c12_48, %c0_49, %c0_50, %c0_51] : memref<13x1x16x32xbf16, #tpu.memory_space<vmem>>, vector<1x1x16x32xbf16>
    %85 = vector.shape_cast %84 : vector<1x1x16x32xbf16> to vector<16x32xbf16>
    %86 = arith.extf %85 : vector<16x32xbf16> to vector<16x32xf32>
    %87 = vector.broadcast %83 : f32 to vector<16x32xf32>
    %88 = arith.mulf %87, %86 : vector<16x32xf32>
    %89 = arith.addf %82, %88 : vector<16x32xf32>
    %c1_i32 = arith.constant 1 : i32
    %90 = arith.cmpi slt, %arg1, %c1_i32 : i32
    %91 = arith.extui %90 : i1 to i32
    %c0_i32 = arith.constant 0 : i32
    %92 = arith.cmpi ne, %91, %c0_i32 : i32
    scf.if %92 {
      %c0_54 = arith.constant 0 : index
      %c0_55 = arith.constant 0 : index
      %c0_56 = arith.constant 0 : index
      %96 = vector.load %arg4[%c0_54, %c0_55, %c0_56] : memref<1x16x32xf32, #tpu.memory_space<vmem>>, vector<1x16x32xf32>
      %97 = vector.shape_cast %96 : vector<1x16x32xf32> to vector<16x32xf32>
      %98 = vector.shape_cast %89 : vector<16x32xf32> to vector<1x16x32xf32>
      tpu.vector_store %arg4[%c0_54, %c0_55, %c0_56], %98 {strides = array<i32>} : memref<1x16x32xf32, #tpu.memory_space<vmem>>, vector<1x16x32xf32>,
    } else {
    }
    %c1_i32_52 = arith.constant 1 : i32
    %93 = arith.cmpi eq, %arg1, %c1_i32_52 : i32
    %94 = arith.extui %93 : i1 to i32
    %c0_i32_53 = arith.constant 0 : i32
    %95 = arith.cmpi ne, %94, %c0_i32_53 : i32
    scf.if %95 {
      %96 = vector.extract_strided_slice %89 {offsets = [14, 0], sizes = [1, 32], strides = [1, 1]} : vector<16x32xf32> to vector<1x32xf32>
      %c0_54 = arith.constant 0 : index
      %c0_55 = arith.constant 0 : index
      %c0_56 = arith.constant 0 : index
      %97 = vector.load %arg4[%c0_54, %c0_55, %c0_56] : memref<1x16x32xf32, #tpu.memory_space<vmem>>, vector<1x1x32xf32>
      %98 = vector.shape_cast %97 : vector<1x1x32xf32> to vector<1x32xf32>
      %99 = vector.shape_cast %96 : vector<1x32xf32> to vector<1x1x32xf32>
      tpu.vector_store %arg4[%c0_54, %c0_55, %c0_56], %99 {strides = array<i32>} : memref<1x16x32xf32, #tpu.memory_space<vmem>>, vector<1x1x32xf32>,
    } else {
    }
    return
  }
  func.func @transform_0(%arg0: i32, %arg1: i32, %arg2: memref<13xf32, #tpu.memory_space<smem>>) -> (i32, i32, i32, i32) {
    %c0_i32 = arith.constant 0 : i32
    %0 = arith.minsi %arg1, %c0_i32 : i32
    %c0_i32_0 = arith.constant 0 : i32
    %c0_i32_1 = arith.constant 0 : i32
    %c0_i32_2 = arith.constant 0 : i32
    return %c0_i32_0, %arg0, %0, %c0_i32_1 : i32, i32, i32, i32
  }
  func.func @transform_1(%arg0: i32, %arg1: i32, %arg2: memref<13xf32, #tpu.memory_space<smem>>) -> (i32, i32, i32) {
    %c0_i32 = arith.constant 0 : i32
    %c0_i32_0 = arith.constant 0 : i32
    return %arg0, %arg1, %c0_i32 : i32, i32, i32
  }
}

</mosaic_0001>

<bundles_post_ra>
// kernel: tpu_custom_call.1
= control target key start
LH: loop header
LB: loop body
LE: loop exit
PB: predicated region body
PF: predicated region fallthrough
CT: control target
= control target key end

     0   :  { %s1317_s0 = inlined_call_operand.hbm [shape: f32[13], index: 0, kind: input, shape index: {}]   ;;  %s1318_s1 = inlined_call_operand.hbm [shape: bf16[13,2,16,32], index: 1, kind: input, shape index: {}]   ;;  %s1319_s2 = inlined_call_operand.vmem [shape: f32[2,17,32], index: 2, kind: output, shape index: {}]  }
   0x1   :  { %s890_s11 = scalar_lea.hbm %s1317_s0, 16 }
   0x2   :  { %p891_p0 = scmp.ne.s32.totalorder %s1317_s0, %s890_s11  ;;  %p894_p1 = scmp.lt.u32.totalorder %s890_s11, %s1317_s0 }
   0x4   :  { %p896_p2 = pnand %p894_p1, %p891_p0 }
   0x6   :  { %899 = shalt.err (!%p896_p2)  }
   0x7   :  { %s1051_s16 = smov [#allocation3]  }
   0x8   :  { %8 = dma.hbm_to_smem %s1317_s0, 16, %s1051_s16, [#allocation2] }
   0x9   :  { %972 = dma.done.wait [#allocation2], 16 }
   0xa   :  { %973 = vsyncadd [#allocation2], 4294967280 }
   0xb   :  { %10 = sfence }
   0xc   :  { %11 = vsyncpa [#allocation5], 0 }
   0xd   :  { %13 = vsyncpa [#allocation5 + $0x1], 0  ;;  %s1085_s19 = smov 0   ;;  %s1087_s20 = smov 0  }
   0xe   :  { %s1089_s21 = smov 0   ;;  %s1091_s22 = smov 0  }
   0xf   :  { %s1093_s23 = smov 0   ;;  %s1095_s24 = smov 0  }
  0x10   :  { %s1097_s25 = smov 0   ;;  %s1099_s0 = smov 0  }
  0x11   :  { %s1101_s26 = smov 0   ;;  %s1103_s27 = smov 0  }
  0x12 LB: > { %s595_s28 = sadd.s32 4294967295, %s1017_s27   ;;  %s28_s29 = sadd.s32 1, %s1009_s0  ;;  %s1017_s27 = sphi %s1103_s27, %s19_s27   ;;  %s1013_s26 = sphi %s1101_s26, %s1334_s26   ;;  %s1009_s0 = sphi %s1099_s0, %s1333_s0   ;;  %s1005_s25 = sphi %s1097_s25, %s1332_s25   ;;  %s1001_s24 = sphi %s1095_s24, %s1331_s24   ;;  %s997_s23 = sphi %s1093_s23, %s1330_s23   ;;  %s993_s22 = sphi %s1091_s22, %s1329_s22   ;;  %s989_s21 = sphi %s1089_s21, %s1328_s21   ;;  %s985_s20 = sphi %s1087_s20, %s1327_s20   ;;  %s981_s19 = sphi %s1085_s19, %s1326_s19  }
  0x13   : > { %p29_p3 = scmp.ge.s32.totalorder %s28_s29, 2  ;;  %s31_s30 = sadd.s32 1, %s1013_s26 }
  0x14   : > { %s44_s3 = sadd.s32 1, %s997_s23  ;;  %p51_p5 = scmp.ne.s32.totalorder %s997_s23, %s993_s22 }
  0x15   : > { %s1336_s29 = smov (%p29_p3, %s28_s29), 0  ;;  %s1338_s30 = smov (!%p29_p3, %s31_s30), %s1013_s26 }
  0x16   : > { %p33_p4 = scmp.ge.s32.totalorder %s1338_s30, 2  ;;  %p52_p6 = scmp.eq.s32.totalorder %s1017_s27, 0 }
  0x17   : > { %p57_p8 = scmp.ne.s32.totalorder %s993_s22, %s989_s21  ;;  %p58_p9 = scmp.eq.s32.totalorder %s595_s28, 0 }
  0x18   : > { %s1340_s30 = smov (%p33_p4, %s1338_s30), 0  ;;  %p1147_p7 = por %p52_p6, %p51_p5 }
  0x19   : > { %1321 = sst [smem:[#allocation12_spill]] %s1340_s30  ;;  %s39_s4 = ssub.s32 %s1013_s26, %s1340_s30 }
  0x1a   : > { %p42_p10 = scmp.eq.s32.totalorder %s39_s4, 0  ;;  %s68_s6 = ssub.s32 %s1009_s0, %s1336_s29 }
  0x1b   : > { %p1154_p11 = por %p58_p9, %p57_p8  ;;  %s69_s8 = sor.u32 %s68_s6, %s39_s4 }
  0x1c   : > { %s1159_s9 = scalar_select %p42_p10, %s997_s23, %s44_s3  }
  0x1d   : > { %p70_p12 = scmp.eq.s32.totalorder %s69_s8, 0  ;;  %s72_s10 = sadd.s32 1, %s985_s20 }
  0x1e   : > { %p82_p13 = scmp.ne.s32.totalorder %s985_s20, %s981_s19  ;;  %p83_p0 = scmp.eq.s32.totalorder %s595_s28, 3 }
  0x1f   : > { %s1165_s11 = scalar_select %p70_p12, %s985_s20, %s72_s10  }
  0x20   : > { %p1167_p1 = por %p83_p0, %p82_p13  ;;  %p598_p2 = scmp.ge.s32.totalorder %s1017_s27, 4 }
  0x22   : > { %105 = sbr.rel (%p598_p2) target bundleno = 54 (0x36), region = 16 }
  0x29   : > { %s109_s13 = sand.u32 1, %s997_s23   ;;  %s978_s15 = sshll.u32 %s1013_s26, 7 }
  0x2a   : > { %s727_s14 = smul.u32 104, %s109_s13  ;;  %s1052_s21 = smov 256  }
  0x2b   : > { %s730_s18 = scalar_select %p1147_p7, [#allocation0], [#allocation9] }
  0x2c   : > { %s113_s16 = scalar_lea.vmem [#allocation4], %s727_s14  ;;  %731 = sst [smem:[#allocation8]] (%p1147_p7), %s1052_s21 }
  0x2d   : > { %s136_s17 = sshll.u32 %s113_s16, 4  ;;  %s128_s28 = sld [smem:[%s730_s18]]   ;;  %s137_s17 = int_to_ptr.vmem [resolvable:$true] %s136_s17 }
  0x2e   : > { %s1053_s3 = smov 128   ;;  %s1054_s4 = smov 2  }
  0x2f   : > { %732 = sst [smem:[#allocation8 + $0x1]] (%p1147_p7), %s1053_s3  ;;  %s123_s10 = scalar_lea.hbm %s1318_s1, %s978_s15 }
  0x30   : > { %733 = sst [smem:[#allocation8 + $0x2]] (%p1147_p7), %s1054_s4  ;;  %s1055_s14 = smov 64  }
  0x31   : > { %734 = sst [smem:[#allocation8 + $0x3]] (%p1147_p7), %s1055_s14  ;;  %s1056_s16 = smov 4  }
  0x32   : > { %735 = sst [smem:[#allocation8 + $0x4]] (%p1147_p7), %s1055_s14  ;;  %s110_s30 = scalar_lea.sflag [#allocation5], %s109_s13 }
  0x33   : > { %736 = sst [smem:[#allocation8 + $0x5]] (%p1147_p7), %s1056_s16  ;;  %s602_s18 = sshll.u32 %s128_s28, 26 }
  0x34   : > { %s603_s21 = sadd.s32 134217728, %s602_s18  ;;  %s1057_s3 = smov [#allocation7]  }
  0x35   : > { %737 = dma.general (%p1147_p7), %s123_s10, 1664, %s137_s17, %s110_s30, %s1057_s3, [#allocation8], %s603_s21, 0  }
  0x36 PF: > { %p604_p3 = scmp.ge.s32.totalorder %s1017_s27, 1  ;;  %p157_p4 = scmp.lt.s32.totalorder %s1017_s27, 5 }
  0x38   : > { %p158_p5 = pnand %p604_p3, %p157_p4 }
  0x39   : > { %s163_s15 = sand.u32 (!%p158_p5), 1, %s993_s22  }
  0x3a   : > { %161 = sbr.rel (%p158_p5) target bundleno = 166 (0xa6), region = 24  ;;  %s164_s6 = scalar_lea.sflag (!%p158_p5), [#allocation5], %s163_s15 }
  0x3b   : > { %s728_s4 = smul.u32 (!%p158_p5), 104, %s163_s15 }
  0x3d   : > { %s1196_s8 = scalar_lea.vmem (!%p158_p5), [#allocation4], %s728_s4 }
  0x41   : > { %975 = dma.done.wait (%p1154_p11), %s164_s6, 1664  }
  0x42   : > { %977 = vsyncadd (%p1154_p11), %s164_s6, 4294965632  ;;  %s182_s30 = sand.u32 1, %s981_s19   ;;  %s193_s13 = sld [smem:[#allocation3]]  ;;  %v664_v0 = vld [vmem:[%s1196_s8] sm:$0xff]   ;;  %v715_v2 = vld [vmem:[%s1196_s8 + $0x8] sm:$0xff]  }
  0x43   : > { %s1203_s5 = sshll.u32 %s182_s30, 4  ;;  %s606_s17 = sld [smem:[#allocation3 + $0x1]]  ;;  %v716_v3 = vld [vmem:[%s1196_s8 + $0x10] sm:$0xff]   ;;  %v665_v4 = vunpack.c.l.bf16 %v664_v0  ;;  %v666_v5 = vunpack.c.h.bf16 %v664_v0  ;;  %v669_v6 = vunpack.c.l.bf16 %v715_v2  ;;  %v670_v7 = vunpack.c.h.bf16 %v715_v2  ;;  %v717_v8 = vld [vmem:[%s1196_s8 + $0x18] sm:$0xff]   ;;  %v718_v13 = vld [vmem:[%s1196_s8 + $0x20] sm:$0xff]  }
  0x44   : > { %s609_s28 = sld [smem:[#allocation3 + $0x2]]  ;;  %s1205_s10 = sld [smem:[#allocation3 + $0x3]]  ;;  %v673_v10 = vunpack.c.l.bf16 %v716_v3  ;;  %v674_v11 = vunpack.c.h.bf16 %v716_v3  ;;  %v677_v20 = vunpack.c.l.bf16 %v717_v8  ;;  %v678_v21 = vunpack.c.h.bf16 %v717_v8  ;;  %v719_v22 = vld [vmem:[%s1196_s8 + $0x28] sm:$0xff]   ;;  %v720_v27 = vld [vmem:[%s1196_s8 + $0x30] sm:$0xff]   ;;  %v721_v36 = vld [vmem:[%s1196_s8 + $0x38] sm:$0xff]  }
  0x45   : > { %s1207_s14 = sld [smem:[#allocation3 + $0x4]]  ;;  %s1212_s7 = sld [smem:[#allocation3 + $0x5]]  ;;  %v681_v26 = vunpack.c.l.bf16 %v718_v13  ;;  %v682_v30 = vunpack.c.h.bf16 %v718_v13  ;;  %v685_v35 = vunpack.c.l.bf16 %v719_v22  ;;  %v686_v38 = vunpack.c.h.bf16 %v719_v22  ;;  %v722_v45 = vld [vmem:[%s1196_s8 + $0x40] sm:$0xff]   ;;  %v723_v54 = vld [vmem:[%s1196_s8 + $0x48] sm:$0xff]   ;;  %v724_v59 = vld [vmem:[%s1196_s8 + $0x50] sm:$0xff]  }
  0x46   : > { %s1216_s19 = sld [smem:[#allocation3 + $0x6]]  ;;  %s1219_s16 = sld [smem:[#allocation3 + $0x7]]  ;;  %v689_v40 = vunpack.c.l.bf16 %v720_v27  ;;  %v690_v44 = vunpack.c.h.bf16 %v720_v27  ;;  %v693_v48 = vunpack.c.l.bf16 %v721_v36  ;;  %v694_v49 = vunpack.c.h.bf16 %v721_v36 }
  0x47   : > { %s1221_s18 = sld [smem:[#allocation3 + $0x8]]  ;;  %s1227_s21 = sld [smem:[#allocation3 + $0x9]]  ;;  %v697_v56 = vunpack.c.l.bf16 %v722_v45  ;;  %v698_v57 = vunpack.c.h.bf16 %v722_v45  ;;  %v701_v2 = vunpack.c.l.bf16 %v723_v54  ;;  %v702_v3 = vunpack.c.h.bf16 %v723_v54 }
  0x48   : > { %v198_v1 = vstv %s193_s13  ;;  %s1230_s3 = sld [smem:[#allocation3 + $0xa]]  ;;  %s1234_s15 = sld [smem:[#allocation3 + $0xb]]  ;;  %v705_v8 = vunpack.c.l.bf16 %v724_v59 }
  0x49   : > { %v207_v9 = vstv %s606_s17  ;;  %v199_v14 = vmul.f32 %v665_v4, %v198_v1  ;;  %v200_v15 = vmul.f32 %v666_v5, %v198_v1  ;;  %s1240_s4 = sld [smem:[#allocation3 + $0xc]]  ;;  %v725_v4 = vld [vmem:[%s1196_s8 + $0x58] sm:$0xff]   ;;  %s1249_s6 = scalar_lea.vmem [#allocation6], %s1203_s5  }
  0x4a   : > { %v218_v12 = vstv %s609_s28  ;;  %v208_v16 = vmul.f32 %v669_v6, %v207_v9  ;;  %v209_v17 = vmul.f32 %v670_v7, %v207_v9  ;;  %v229_v25 = vstv %s1205_s10  ;;  %p642_p6 = scmp.ge.s32.totalorder %s1001_s24, 1 }
  0x4b   : > { %v219_v18 = vmul.f32 %v673_v10, %v218_v12  ;;  %v220_v19 = vmul.f32 %v674_v11, %v218_v12  ;;  %v230_v28 = vmul.f32 %v677_v20, %v229_v25  ;;  %v231_v29 = vmul.f32 %v678_v21, %v229_v25  ;;  %v726_v12 = vld [vmem:[%s1196_s8 + $0x60] sm:$0xff]  }
  0x4c   : > { %v210_v23 = vadd.f32 %v208_v16, %v199_v14  ;;  %v211_v24 = vadd.f32 %v209_v17, %v200_v15  ;;  %v240_v31 = vstv %s1207_s14  ;;  %v251_v39 = vstv %s1212_s7 }
  0x4d   : > { %v241_v34 = vmul.f32 %v681_v26, %v240_v31  ;;  %v242_v37 = vmul.f32 %v682_v30, %v240_v31  ;;  %v252_v43 = vmul.f32 %v685_v35, %v251_v39  ;;  %v253_v46 = vmul.f32 %v686_v38, %v251_v39 }
  0x4e   : > { %v221_v32 = vadd.f32 %v219_v18, %v210_v23  ;;  %v222_v33 = vadd.f32 %v220_v19, %v211_v24  ;;  %v262_v47 = vstv %s1216_s19  ;;  %v273_v55 = vstv %s1219_s16 }
  0x4f   : > { %v263_v52 = vmul.f32 %v689_v40, %v262_v47  ;;  %v264_v53 = vmul.f32 %v690_v44, %v262_v47  ;;  %v284_v58 = vstv %s1221_s18  ;;  %v274_v62 = vmul.f32 %v693_v48, %v273_v55 }
  0x50   : > { %v232_v41 = vadd.f32 %v230_v28, %v221_v32  ;;  %v233_v42 = vadd.f32 %v231_v29, %v222_v33  ;;  %v275_v63 = vmul.f32 %v694_v49, %v273_v55  ;;  %v285_v0 = vmul.f32 %v697_v56, %v284_v58 }
  0x51   : > { %v286_v1 = vmul.f32 %v698_v57, %v284_v58  ;;  %v295_v7 = vstv %s1227_s21  ;;  %v706_v10 = vunpack.c.h.bf16 %v724_v59  ;;  %v306_v11 = vstv %s1230_s3 }
  0x52   : > { %v243_v50 = vadd.f32 %v241_v34, %v232_v41  ;;  %v244_v51 = vadd.f32 %v242_v37, %v233_v42  ;;  %v296_v9 = vmul.f32 %v701_v2, %v295_v7  ;;  %v297_v15 = vmul.f32 %v702_v3, %v295_v7 }
  0x53   : > { %v709_v16 = vunpack.c.l.bf16 %v725_v4  ;;  %v307_v17 = vmul.f32 %v705_v8, %v306_v11  ;;  %v308_v18 = vmul.f32 %v706_v10, %v306_v11  ;;  %v710_v19 = vunpack.c.h.bf16 %v725_v4 }
  0x54   : > { %v254_v60 = vadd.f32 %v252_v43, %v243_v50  ;;  %v255_v61 = vadd.f32 %v253_v46, %v244_v51  ;;  %v317_v20 = vstv %s1234_s15  ;;  %v713_v23 = vunpack.c.l.bf16 %v726_v12 }
  0x55   : > { %v714_v24 = vunpack.c.h.bf16 %v726_v12  ;;  %v328_v25 = vstv %s1240_s4  ;;  %v318_v28 = vmul.f32 %v709_v16, %v317_v20  ;;  %v319_v29 = vmul.f32 %v710_v19, %v317_v20 }
  0x56   : > { %v265_v5 = vadd.f32 %v263_v52, %v254_v60  ;;  %v266_v6 = vadd.f32 %v264_v53, %v255_v61  ;;  %v329_v32 = vmul.f32 %v713_v23, %v328_v25  ;;  %vm337_vm0 = vcmask (!%p642_p6), 261120  }
  0x57   : > { %v330_v33 = vmul.f32 %v714_v24, %v328_v25 }
  0x58   : > { %v276_v13 = vadd.f32 %v274_v62, %v265_v5  ;;  %v277_v14 = vadd.f32 %v275_v63, %v266_v6 }
  0x5a   : > { %v287_v21 = vadd.f32 %v285_v0, %v276_v13  ;;  %v288_v22 = vadd.f32 %v286_v1, %v277_v14 }
  0x5c   : > { %v298_v26 = vadd.f32 %v296_v9, %v287_v21  ;;  %v299_v27 = vadd.f32 %v297_v15, %v288_v22  ;;  %336 = sbr.rel (%p642_p6) target bundleno = 101 (0x65), region = 32 }
  0x5e   : > { %v309_v30 = vadd.f32 %v307_v17, %v298_v26  ;;  %v310_v31 = vadd.f32 %v308_v18, %v299_v27 }
  0x60   : > { %v320_v34 = vadd.f32 %v318_v28, %v309_v30  ;;  %v321_v35 = vadd.f32 %v319_v29, %v310_v31 }
  0x62   : > { %v331_v36 = vadd.f32 %v329_v32, %v320_v34  ;;  %v332_v37 = vadd.f32 %v330_v33, %v321_v35 }
  0x64   : > { %338 = vst.msk [vmem:[%s1249_s6] sm:$0xff] %vm337_vm0, %v331_v36  ;;  %339 = vst.msk [vmem:[%s1249_s6 + $0x8] sm:$0xff] %vm337_vm0, %v332_v37 }
  0x65 PF: > { %p643_p7 = scmp.ne.s32.totalorder %s1001_s24, 1 }
  0x66   : > { %vm344_vm1 = vcmask (!%p643_p7), 260102  }
  0x67   : > { %343 = sbr.rel (%p643_p7) target bundleno = 110 (0x6e), region = 36  ;;  %345 = vst.msk [vmem:[%s1249_s6 - $0x6] sm:$0x40] (!%p643_p7), %vm344_vm1, %v332_v37 }
  0x6e PF: > { %352 = sbr.rel (!%p1167_p1) target bundleno = 166 (0xa6), region = 40  ;;  %s645_s8 = sshll.u32 (%p1167_p1), %s1001_s24, 1 }
  0x6f   : > { %s729_s30 = smul.u32 (%p1167_p1), 3, %s1005_s25  ;;  %s354_s5 = ssub.s32 (%p1167_p1), 3, %s645_s8 }
  0x70   : > { %p355_p8 = scmp.lt.s32.totalorder (%p1167_p1), %s354_s5, 2 }
  0x71   : > { %s360_s13 = sadd.s32 (%p1167_p1), %s729_s30, %s645_s8 }
  0x72   : > { %s648_s17 = sshll.u32 (%p1167_p1), %s360_s13, 3 }
  0x73   : > { %s1265_s14 = scalar_lea.vmem (%p1167_p1), %s1319_s2, %s648_s17  }
  0x75   : > { %s1342_s5 = smov (!%p355_p8, %s354_s5), 2 }
  0x76   : > { %s646_s7 = sshll.u32 %s1342_s5, 7 }
  0x77   : > { %p649_p9 = scmp.eq.s32.totalorder %s646_s7, 0 }
  0x78   : > { %s1269_s12 = sshrl.u32 (!%p649_p9), %s1342_s5, 1 }
  0x79   : > { %365 = sbr.rel (%p649_p9) target bundleno = 166 (0xa6), region = 44  ;;  %p650_p10 = scmp.le.s32.totalorder (!%p649_p9), %s1269_s12, 0 }
  0x80   : > { %537 = sbr.rel (%p650_p10) target bundleno = 145 (0x91), region = 143  ;;  %s1019_s24 = smov (!%p650_p10), %s1265_s14  }
  0x81   : > { %s1023_s25 = smov (!%p650_p10), %s1249_s6   ;;  %s1027_s19 = smov (!%p650_p10), 0  }
  0x82   : > { %s1031_s16 = smov (!%p650_p10), 0  }
  0x87 LB: >> { %v429_v38 = vld [vmem:[%s1025_s25] sm:$0xff]  ;;  %v431_v39 = vld [vmem:[%s1025_s25 + $0x8] sm:$0xff]  ;;  %s433_s18 = sadd.s32 1, %s1029_s19  ;;  %s423_s16 = sadd.s32 1, %s1033_s16   ;;  %s1033_s16 = sphi %s1031_s16, %s423_s16   ;;  %s1029_s19 = sphi %s1027_s19, %s1028_s19   ;;  %s1025_s25 = sphi %s1023_s25, %s438_s25   ;;  %s1021_s24 = sphi %s1019_s24, %s439_s24  }
  0x88   : >> { %430 = vst [vmem:[%s1021_s24] sm:$0xff] %v429_v38  ;;  %432 = vst [vmem:[%s1021_s24 + $0x8] sm:$0xff] %v431_v39  ;;  %p434_p11 = scmp.ge.s32.totalorder %s433_s18, %s1269_s12  ;;  %p422_p12 = scmp.ge.s32.totalorder %s423_s16, %s1269_s12 }
  0x8a   : >> { %s1344_s18 = smov (%p434_p11, %s433_s18), 0  ;;  %425 = sbr.rel (!%p422_p12) target bundleno = 135 (0x87), region = 149 }
  0x8b   : >> { %s651_s21 = sshll.u32 %s1344_s18, 4  ;;  %s1028_s19 = smov %s1344_s18  }
  0x8c   : >> { %s438_s25 = scalar_lea.vmem %s1249_s6, %s651_s21 [#allocation6]   ;;  %s439_s24 = scalar_lea.vmem %s1265_s14, %s651_s21  }
  0x91 PF: > { %s1279_s3 = sand.u32 1, %s1342_s5   ;;  %s661_s15 = sshll.u32 %s1269_s12, 4 }
  0x92   : > { %s444_s4 = scalar_lea.vmem %s1249_s6, %s661_s15 [#allocation6]   ;;  %s446_s8 = scalar_lea.vmem %s1265_s14, %s661_s15  }
  0x93   : > { %p656_p13 = scmp.le.s32.totalorder %s1279_s3, 0 }
  0x94   : > { %s1035_s30 = smov (!%p656_p13), %s446_s8   ;;  %s1039_s13 = smov (!%p656_p13), %s444_s4  }
  0x95   : > { %551 = sbr.rel (%p656_p13) target bundleno = 166 (0xa6), region = 154  ;;  %s1043_s17 = smov (!%p656_p13), 0  }
  0x96   : > { %s1047_s28 = smov (!%p656_p13), 0  }
  0x9c LB: >> { %v456_v40 = vld [vmem:[%s1041_s13] sm:$0xff]  ;;  %s458_s5 = sadd.s32 1, %s1045_s17  ;;  %s450_s28 = sadd.s32 1, %s1049_s28   ;;  %s1049_s28 = sphi %s1047_s28, %s450_s28   ;;  %s1045_s17 = sphi %s1043_s17, %s1044_s17   ;;  %s1041_s13 = sphi %s1039_s13, %s463_s13   ;;  %s1037_s30 = sphi %s1035_s30, %s464_s30  }
  0x9d   : >> { %457 = vst [vmem:[%s1037_s30] sm:$0xff] %v456_v40  ;;  %p459_p0 = scmp.ge.s32.totalorder %s458_s5, %s1279_s3  ;;  %p449_p1 = scmp.ge.s32.totalorder %s450_s28, %s1279_s3 }
  0x9f   : >> { %s1346_s5 = smov (%p459_p0, %s458_s5), 0  ;;  %452 = sbr.rel (!%p449_p1) target bundleno = 156 (0x9c), region = 160 }
  0xa0   : >> { %s657_s6 = sshll.u32 %s1346_s5, 3  ;;  %s1044_s17 = smov %s1346_s5  }
  0xa1   : >> { %s463_s13 = scalar_lea.vmem %s444_s4, %s657_s6 [#allocation6]   ;;  %s464_s30 = scalar_lea.vmem %s446_s8, %s657_s6  }
  0xa6 PF: > { %s19_s27 = sadd.s32 1, %s1017_s27   ;;  %s1325_s10 = sld [smem:[#allocation12_spill]] }
  0xa7   : > { %p16_p2 = scmp.ge.s32.totalorder %s19_s27, 6   ;;  %s1326_s19 = smov %s985_s20 }
  0xa8   : > { %s1327_s20 = smov %s1165_s11  ;;  %s1328_s21 = smov %s993_s22 }
  0xa9   : > { %s1329_s22 = smov %s997_s23  ;;  %s1330_s23 = smov %s1159_s9 }
  0xaa   : > { %s1331_s24 = smov %s1009_s0  ;;  %s1332_s25 = smov %s1013_s26 }
  0xab   : > { %s1333_s0 = smov %s1336_s29  ;;  %18 = sbr.rel (!%p16_p2) target bundleno = 18 (0x12), region = 171 }
  0xac   : > { %s1334_s26 = smov %s1325_s10 }
  0xb2   :  { %480 = vsyncpa [#allocation5], 1 }
  0xb3   :  { %482 = vsyncpa [#allocation5 + $0x1], 1 }

</bundles_post_ra>
